<compile_context>
chip_gen: v7x
topology: tpu7x:2x2x1
jax: 0.10.0
libtpu: 0.0.40
codegen_flags: <defaults>
</compile_context>

<pallas_src>
import functools

import jax
import jax.numpy as jnp
from jax import lax
from jax.experimental import pallas as pl
from jax.experimental.pallas import tpu as pltpu


# ---------------------------------------------------------------------------
# Kernels (grid-less: the whole (B, I*D) problem is one lane-dense invocation)
# ---------------------------------------------------------------------------
def _ode_euler_kernel(n_steps,
                      dt_ref,                       # SMEM (1,) substep size
                      h_ref,                        # (B, N)
                      urz_ref,                      # (N, 2N) block-diag [U_r | U_z]
                      uh_ref,                       # (N, N)  block-diag U_h
                      brz_ref,                      # (1, 2N)
                      bh_ref,                       # (1, N)
                      hnew_ref, ht_ref):            # (B, N) outputs
    n = uh_ref.shape[0]
    dt = dt_ref[0]
    urz = urz_ref[...]
    uh = uh_ref[...]
    brz = brz_ref[...]
    bh = bh_ref[...]
    h0 = h_ref[...].astype(jnp.float32)

    def body(_, carry):
        h, _ = carry
        rz = jnp.dot(h, urz, preferred_element_type=jnp.float32) + brz
        r = jax.nn.sigmoid(rz[:, :n])
        z = jax.nn.sigmoid(rz[:, n:])
        h_tilde = jnp.tanh(
            jnp.dot(r * h, uh, preferred_element_type=jnp.float32) + bh)
        dh = (1.0 - z) * (h_tilde - h)
        return h + dt * dh, h_tilde

    h_fin, ht_fin = lax.fori_loop(0, n_steps, body,
                                  (h0, jnp.zeros_like(h0)), unroll=True)
    hnew_ref[...] = h_fin.astype(hnew_ref.dtype)
    ht_ref[...] = ht_fin.astype(ht_ref.dtype)


def _gru_obs_kernel(x_ref,                          # (Bp, N) lane-dense x (repeated)
                    h_ref,                          # (Bp, N)
                    wr_ref, wz_ref, wh_ref,         # (1, N) each (flattened W_*)
                    urz_ref,                        # (N, 2N)
                    uh_ref,                         # (N, N)
                    brz_ref, bh_ref,                # (1, 2N), (1, N)
                    hnew_ref, ht_ref):              # (Bp, N) outputs
    n = uh_ref.shape[0]
    x = x_ref[...].astype(jnp.float32)
    h = h_ref[...].astype(jnp.float32)
    rz = jnp.dot(h, urz_ref[...], preferred_element_type=jnp.float32) + brz_ref[...]
    r = jax.nn.sigmoid(rz[:, :n] + x * wr_ref[...])
    z = jax.nn.sigmoid(rz[:, n:] + x * wz_ref[...])
    h_tilde = jnp.tanh(
        x * wh_ref[...]
        + jnp.dot(r * h, uh_ref[...], preferred_element_type=jnp.float32)
        + bh_ref[...])
    h_new = z * h + (1.0 - z) * h_tilde
    hnew_ref[...] = h_new.astype(hnew_ref.dtype)
    ht_ref[...] = h_tilde.astype(ht_ref.dtype)


# ---------------------------------------------------------------------------
# Parameter helpers (mirrors reset_parameters: U orthogonal per block, b = 0,
# W ~ N(0,1))
# ---------------------------------------------------------------------------
def _orthogonal_stack(key, n_stack, dim):
    a = jax.random.normal(key, (n_stack, dim, dim), jnp.float32)
    q, r = jnp.linalg.qr(a)
    d = jnp.sign(jnp.diagonal(r, axis1=-2, axis2=-1))
    d = jnp.where(d == 0, 1.0, d)
    return q * d[:, None, :]


def _block_diag(u_stack):
    """(I, D, D) stack of blocks -> (I*D, I*D) block-diagonal matrix."""
    i, d, _ = u_stack.shape
    eye = jnp.eye(i, dtype=u_stack.dtype)
    out = eye[:, None, :, None] * u_stack[:, :, None, :]    # (I, D, I, D)
    return out.reshape(i * d, i * d)


# ---------------------------------------------------------------------------
# Module wrapper
# ---------------------------------------------------------------------------
class MgnGRUODE:
    """JAX/Pallas port of mgn_GRUODE (minimal=False, bias=True, solver='euler')."""

    def __init__(self, input_size, n_dim, bias=True, solver="euler",
                 minimal=False, key=None):
        assert bias, "only the bias=True path is implemented"
        assert not minimal, "non-minimal (GRUCell / mgn_GRUODECell) variant implemented"
        assert solver == "euler"
        if key is None:
            key = jax.random.PRNGKey(0)
        self.I = input_size
        self.D = n_dim
        self.N = input_size * n_dim
        N = self.N
        ks = jax.random.split(key, 9)

        # --- mgn_GRUODECell params (ODE flow) ---
        U_r_c = _orthogonal_stack(ks[0], input_size, n_dim)
        U_z_c = _orthogonal_stack(ks[1], input_size, n_dim)
        U_h_c = _orthogonal_stack(ks[2], input_size, n_dim)
        self.U_rz_c = jnp.concatenate([_block_diag(U_r_c), _block_diag(U_z_c)],
                                      axis=1)                     # (N, 2N)
        self.U_h_c_blk = _block_diag(U_h_c)                        # (N, N)
        self.b_rz_c = jnp.zeros((1, 2 * N), jnp.float32)
        self.b_h_c = jnp.zeros((1, N), jnp.float32)

        # --- GRUCell params (observation update) ---
        W_r_d = jax.random.normal(ks[3], (input_size, 1, n_dim), jnp.float32)
        W_z_d = jax.random.normal(ks[4], (input_size, 1, n_dim), jnp.float32)
        W_h_d = jax.random.normal(ks[5], (input_size, 1, n_dim), jnp.float32)
        U_r_d = _orthogonal_stack(ks[6], input_size, n_dim)
        U_z_d = _orthogonal_stack(ks[7], input_size, n_dim)
        U_h_d = _orthogonal_stack(ks[8], input_size, n_dim)
        self.W_r_d = W_r_d.reshape(1, N)
        self.W_z_d = W_z_d.reshape(1, N)
        self.W_h_d = W_h_d.reshape(1, N)
        self.U_rz_d = jnp.concatenate([_block_diag(U_r_d), _block_diag(U_z_d)],
                                      axis=1)                     # (N, 2N)
        self.U_h_d_blk = _block_diag(U_h_d)                        # (N, N)
        self.b_rz_d = jnp.zeros((1, 2 * N), jnp.float32)
        self.b_h_d = jnp.zeros((1, N), jnp.float32)

        # keep the original stacked forms for the pure-JAX reference check
        self._ref = dict(U_r_c=U_r_c, U_z_c=U_z_c, U_h_c=U_h_c,
                         W_r_d=W_r_d, W_z_d=W_z_d, W_h_d=W_h_d,
                         U_r_d=U_r_d, U_z_d=U_z_d, U_h_d=U_h_d)

    # ------------------------------------------------------------------ ODE
    def _ode_step(self, mgn_h, delta_t, n_steps=1):
        B = mgn_h.shape[0]
        N = self.N
        dt_sub = jnp.asarray([delta_t / n_steps], jnp.float32)

        vmem = pl.BlockSpec(memory_space=pltpu.MemorySpace.VMEM)
        smem = pl.BlockSpec(memory_space=pltpu.MemorySpace.SMEM)

        h_new, h_tilde = pl.pallas_call(
            functools.partial(_ode_euler_kernel, n_steps),
            in_specs=[smem, vmem, vmem, vmem, vmem, vmem],
            out_specs=(vmem, vmem),
            out_shape=(jax.ShapeDtypeStruct((B, N), mgn_h.dtype),
                       jax.ShapeDtypeStruct((B, N), mgn_h.dtype)),
        )(dt_sub, mgn_h, self.U_rz_c, self.U_h_c_blk, self.b_rz_c, self.b_h_c)
        return h_new, h_tilde

    # --------------------------------------------------------------- update
    def _obs_update(self, mgn_h, mgn_h_tilde, X_obs, i_obs):
        B = mgn_h.shape[0]
        N, I, D = self.N, self.I, self.D
        n_obs = X_obs.shape[0]
        B_pad = B                               # fixed padded shape: no recompiles
        assert n_obs <= B_pad
        pad = B_pad - n_obs

        i_obs = i_obs.astype(jnp.int32)
        idx_gather = jnp.concatenate([i_obs, jnp.zeros((pad,), jnp.int32)])
        # pad scatter indices out-of-bounds -> dropped rows (no effect on output)
        idx_scatter = jnp.concatenate([i_obs, jnp.full((pad,), B, jnp.int32)])

        X_pad = jnp.concatenate(
            [X_obs.astype(jnp.float32), jnp.zeros((pad, I), jnp.float32)], axis=0)
        x_rep = jnp.repeat(X_pad, D, axis=1)                      # (B_pad, N)
        h_sel = mgn_h[idx_gather]                                 # (B_pad, N)

        vmem = pl.BlockSpec(memory_space=pltpu.MemorySpace.VMEM)
        h_new_p, h_tilde_p = pl.pallas_call(
            _gru_obs_kernel,
            in_specs=[vmem] * 9,
            out_specs=(vmem, vmem),
            out_shape=(jax.ShapeDtypeStruct((B_pad, N), mgn_h.dtype),
                       jax.ShapeDtypeStruct((B_pad, N), mgn_h.dtype)),
        )(x_rep, h_sel,
          self.W_r_d, self.W_z_d, self.W_h_d,
          self.U_rz_d, self.U_h_d_blk,
          self.b_rz_d, self.b_h_d)

        # scatter back into the full batch (temp_h[i_obs] = ...); padded rows dropped
        mgn_h = mgn_h.at[idx_scatter].set(h_new_p, mode="drop")
        mgn_h_tilde = mgn_h_tilde.at[idx_scatter].set(h_tilde_p, mode="drop")
        return mgn_h, mgn_h_tilde

    # ---------------------------------------------------------------- call
    def __call__(self, current_time, mgn_h, delta_t, mgn_h_tilde=None,
                 X_obs=None, i_obs=None, update=False, n_steps=1):
        if update:
            assert X_obs is not None and i_obs is not None and mgn_h_tilde is not None
            return self._obs_update(mgn_h, mgn_h_tilde, X_obs, i_obs)
        else:
            return self._ode_step(mgn_h, delta_t, n_steps=n_steps)


# ---------------------------------------------------------------------------
# Pure-JAX references (mirror the PyTorch module) for correctness checking
# ---------------------------------------------------------------------------
def _ref_ode_step(model, h, delta_t, n_steps=1):
    B = h.shape[0]
    I, D = model.I, model.D
    p = model._ref
    dt = delta_t / n_steps
    hp = jax.lax.Precision.HIGHEST
    ht_out = jnp.zeros_like(h)
    for _ in range(n_steps):
        hb = h.reshape(B, I, D)
        r = jax.nn.sigmoid(jnp.einsum('bij,ijk->bik', hb, p['U_r_c'], precision=hp))
        z = jax.nn.sigmoid(jnp.einsum('bij,ijk->bik', hb, p['U_z_c'], precision=hp))
        hti = jnp.tanh(jnp.einsum('bij,ijk->bik', r * hb, p['U_h_c'], precision=hp))
        dh = (1.0 - z) * (hti - hb)
        h = (hb + dt * dh).reshape(B, I * D)
        ht_out = hti.reshape(B, I * D)
    return h, ht_out


def _ref_obs_update(model, mgn_h, mgn_h_tilde, X_obs, i_obs):
    I, D = model.I, model.D
    p = model._ref
    hp = jax.lax.Precision.HIGHEST
    h_sel = mgn_h[i_obs].reshape(-1, I, D)
    x = X_obs[:, :, None]                                       # (n_obs, I, 1)
    r = jax.nn.sigmoid(jnp.einsum('bij,ijk->bik', x, p['W_r_d'], precision=hp)
                       + jnp.einsum('bij,ijk->bik', h_sel, p['U_r_d'], precision=hp))
    z = jax.nn.sigmoid(jnp.einsum('bij,ijk->bik', x, p['W_z_d'], precision=hp)
                       + jnp.einsum('bij,ijk->bik', h_sel, p['U_z_d'], precision=hp))
    hti = jnp.tanh(jnp.einsum('bij,ijk->bik', x, p['W_h_d'], precision=hp)
                   + jnp.einsum('bij,ijk->bik', r * h_sel, p['U_h_d'], precision=hp))
    h_new = z * h_sel + (1.0 - z) * hti
    out_h = mgn_h.at[i_obs].set(h_new.reshape(-1, I * D))
    out_ht = mgn_h_tilde.at[i_obs].set(hti.reshape(-1, I * D))
    return out_h, out_ht


# ---------------------------------------------------------------------------
if __name__ == "__main__":
    root = jax.random.PRNGKey(0)
    k_param, k_h, k_x = jax.random.split(root, 3)

    B, INPUT_SIZE, N_DIM = 8, 4, 32                     # N = I*D = 128 lanes
    model = MgnGRUODE(INPUT_SIZE, N_DIM, bias=True, solver="euler",
                      minimal=False, key=k_param)

    mgn_h = jax.random.normal(k_h, (B, INPUT_SIZE * N_DIM), jnp.float32)

    # 1) ODE propagation step (update=False): explicit Euler over delta_t.
    h1, ht1 = model(0.0, mgn_h, 0.1)

    # 2) Observation update (update=True) on a subset of the batch.
    i_obs = jnp.array([0, 2, 5], dtype=jnp.int32)
    X_obs = jax.random.normal(k_x, (3, INPUT_SIZE), jnp.float32)
    h2, ht2 = model(0.1, h1, 0.1, mgn_h_tilde=ht1, X_obs=X_obs,
                    i_obs=i_obs, update=True)

    jax.block_until_ready((h1, ht1, h2, ht2))
    assert h1.shape == (B, INPUT_SIZE * N_DIM)
    assert ht1.shape == (B, INPUT_SIZE * N_DIM)
    assert h2.shape == (B, INPUT_SIZE * N_DIM)
    assert ht2.shape == (B, INPUT_SIZE * N_DIM)

    # correctness check against a pure-JAX reference of the PyTorch module
    rh1, rht1 = _ref_ode_step(model, mgn_h, 0.1)
    rh2, rht2 = _ref_obs_update(model, rh1, rht1, X_obs, i_obs)
    tol = dict(atol=5e-3, rtol=5e-3)
    assert jnp.allclose(h1, rh1, **tol)
    assert jnp.allclose(ht1, rht1, **tol)
    assert jnp.allclose(h2, rh2, **tol)
    assert jnp.allclose(ht2, rht2, **tol)

    print("KERNEL_OK")
</pallas_src>

<mosaic_0001>
module attributes {stable_mosaic.version = 11 : i64} {
  func.func @_ode_euler_kernel(%arg0: memref<1xf32, #tpu.memory_space<smem>>, %arg1: memref<8x128xf32, #tpu.memory_space<vmem>>, %arg2: memref<128x256xf32, #tpu.memory_space<vmem>>, %arg3: memref<128x128xf32, #tpu.memory_space<vmem>>, %arg4: memref<1x256xf32, #tpu.memory_space<vmem>>, %arg5: memref<1x128xf32, #tpu.memory_space<vmem>>, %arg6: memref<8x128xf32, #tpu.memory_space<vmem>>, %arg7: memref<8x128xf32, #tpu.memory_space<vmem>>) attributes {dimension_semantics = [], scalar_prefetch = 0 : i64, scratch_operands = 0 : i64, tpu.core_type = #tpu.core_type<tc>} {
    %c0 = arith.constant 0 : index
    %0 = memref.load %arg0[%c0] : memref<1xf32, #tpu.memory_space<smem>>
    %c0_0 = arith.constant 0 : index
    %c0_1 = arith.constant 0 : index
    %1 = vector.load %arg2[%c0_0, %c0_1] : memref<128x256xf32, #tpu.memory_space<vmem>>, vector<128x256xf32>
    %c0_2 = arith.constant 0 : index
    %c0_3 = arith.constant 0 : index
    %2 = vector.load %arg3[%c0_2, %c0_3] : memref<128x128xf32, #tpu.memory_space<vmem>>, vector<128x128xf32>
    %c0_4 = arith.constant 0 : index
    %c0_5 = arith.constant 0 : index
    %3 = vector.load %arg4[%c0_4, %c0_5] : memref<1x256xf32, #tpu.memory_space<vmem>>, vector<1x256xf32>
    %c0_6 = arith.constant 0 : index
    %c0_7 = arith.constant 0 : index
    %4 = vector.load %arg5[%c0_6, %c0_7] : memref<1x128xf32, #tpu.memory_space<vmem>>, vector<1x128xf32>
    %c0_8 = arith.constant 0 : index
    %c0_9 = arith.constant 0 : index
    %5 = vector.load %arg1[%c0_8, %c0_9] : memref<8x128xf32, #tpu.memory_space<vmem>>, vector<8x128xf32>
    %cst = arith.constant 0.000000e+00 : f32
    %6 = vector.broadcast %cst : f32 to vector<8x128xf32>
    %c0_i32 = arith.constant 0 : i32
    %cst_10 = arith.constant dense<0.000000e+00> : vector<8x256xf32>
    %7 = tpu.matmul %5, %1, %cst_10 {dimension_numbers = #tpu.dot_dimension_numbers<[1], [0], [0], [1], [0, 0, 1, 1], [], []>} : vector<8x128xf32>, vector<128x256xf32>, vector<8x256xf32> -> vector<8x256xf32>
    %8 = vector.broadcast %3 : vector<1x256xf32> to vector<8x256xf32>
    %9 = arith.addf %7, %8 : vector<8x256xf32>
    %10 = vector.extract_strided_slice %9 {offsets = [0, 0], sizes = [8, 128], strides = [1, 1]} : vector<8x256xf32> to vector<8x128xf32>
    %11 = arith.negf %10 : vector<8x128xf32>
    %12 = math.exp %11 : vector<8x128xf32>
    %cst_11 = arith.constant 1.000000e+00 : f32
    %13 = vector.broadcast %cst_11 : f32 to vector<8x128xf32>
    %14 = arith.addf %13, %12 : vector<8x128xf32>
    %15 = arith.divf %13, %14 : vector<8x128xf32>
    %16 = vector.extract_strided_slice %9 {offsets = [0, 128], sizes = [8, 128], strides = [1, 1]} : vector<8x256xf32> to vector<8x128xf32>
    %17 = arith.negf %16 : vector<8x128xf32>
    %18 = math.exp %17 : vector<8x128xf32>
    %cst_12 = arith.constant 1.000000e+00 : f32
    %19 = vector.broadcast %cst_12 : f32 to vector<8x128xf32>
    %20 = arith.addf %19, %18 : vector<8x128xf32>
    %21 = arith.divf %19, %20 : vector<8x128xf32>
    %22 = arith.mulf %15, %5 : vector<8x128xf32>
    %cst_13 = arith.constant dense<0.000000e+00> : vector<8x128xf32>
    %23 = tpu.matmul %22, %2, %cst_13 {dimension_numbers = #tpu.dot_dimension_numbers<[1], [0], [0], [1], [0, 0, 1, 1], [], []>} : vector<8x128xf32>, vector<128x128xf32>, vector<8x128xf32> -> vector<8x128xf32>
    %24 = vector.broadcast %4 : vector<1x128xf32> to vector<8x128xf32>
    %25 = arith.addf %23, %24 : vector<8x128xf32>
    %26 = math.tanh %25 : vector<8x128xf32>
    %cst_14 = arith.constant 1.000000e+00 : f32
    %27 = vector.broadcast %cst_14 : f32 to vector<8x128xf32>
    %28 = arith.subf %27, %21 : vector<8x128xf32>
    %29 = arith.subf %26, %5 : vector<8x128xf32>
    %30 = arith.mulf %28, %29 : vector<8x128xf32>
    %31 = vector.broadcast %0 : f32 to vector<8x128xf32>
    %32 = arith.mulf %31, %30 : vector<8x128xf32>
    %33 = arith.addf %5, %32 : vector<8x128xf32>
    %c0_15 = arith.constant 0 : index
    %c0_16 = arith.constant 0 : index
    %34 = vector.load %arg6[%c0_15, %c0_16] : memref<8x128xf32, #tpu.memory_space<vmem>>, vector<8x128xf32>
    tpu.vector_store %arg6[%c0_15, %c0_16], %33 {strides = array<i32>} : memref<8x128xf32, #tpu.memory_space<vmem>>, vector<8x128xf32>,
    %c0_17 = arith.constant 0 : index
    %c0_18 = arith.constant 0 : index
    %35 = vector.load %arg7[%c0_17, %c0_18] : memref<8x128xf32, #tpu.memory_space<vmem>>, vector<8x128xf32>
    tpu.vector_store %arg7[%c0_17, %c0_18], %26 {strides = array<i32>} : memref<8x128xf32, #tpu.memory_space<vmem>>, vector<8x128xf32>,
    return
  }
}

</mosaic_0001>

<bundles_post_ra>
// kernel: tpu_custom_call.1
= control target key start
LH: loop header
LB: loop body
LE: loop exit
PB: predicated region body
PF: predicated region fallthrough
CT: control target
= control target key end

     0   :  { %14 = vsyncpa [#allocation4], 0  ;;  %s717_s0 = inlined_call_operand.<no memory space> [shape: f32[1], index: 0, kind: input, shape index: {}]   ;;  %s718_s1 = inlined_call_operand.hbm [shape: f32[8,128], index: 1, kind: input, shape index: {}]   ;;  %s719_s2 = inlined_call_operand.hbm [shape: f32[128,256], index: 2, kind: input, shape index: {}]   ;;  %s720_s3 = inlined_call_operand.hbm [shape: f32[128,128], index: 3, kind: input, shape index: {}]   ;;  %s721_s4 = inlined_call_operand.vmem [shape: f32[1,256], index: 4, kind: input, shape index: {}]   ;;  %s722_s5 = inlined_call_operand.vmem [shape: f32[1,128], index: 5, kind: input, shape index: {}]   ;;  %s723_s6 = inlined_call_operand.hbm [shape: f32[8,128], index: 6, kind: output, shape index: {0}]   ;;  %s724_s7 = inlined_call_operand.hbm [shape: f32[8,128], index: 7, kind: output, shape index: {1}]  }
   0x1   :  { %15 = vsyncpa [#allocation7], 0 }
   0x2   :  { %16 = vsyncpa [#allocation5], 0 }
   0x3   :  { %17 = vsyncpa [#allocation11], 0  ;;  %s580_s24 = smov [#allocation6]   ;;  %s462_s28 = scalar_lea.hbm %s719_s2, 4096 }
   0x4   :  { %s35_s25 = sshll.u32 %s580_s24, 4  ;;  %p463_p0 = scmp.ne.s32.totalorder %s719_s2, %s462_s28  ;;  %s36_s25 = int_to_ptr.vmem [resolvable:$true] %s35_s25 }
   0x5   :  { %p466_p1 = scmp.lt.u32.totalorder %s462_s28, %s719_s2 }
   0x7   :  { %p468_p2 = pnand %p466_p1, %p463_p0 }
   0x9   :  { %471 = shalt.err (!%p468_p2)
}
   0xa   :  { %s472_s10 = scalar_lea.vmem %s36_s25, 4096  ;;  %p477_p4 = scmp.lt.s32.totalorder %s36_s25, %s36_s25 }
   0xb   :  { %p473_p3 = scmp.ne.s32.totalorder %s36_s25, %s472_s10  ;;  %p478_p5 = scmp.lt.s32.totalorder %s472_s10, %s472_s10 }
   0xd   :  { %p479_p6 = por %p478_p5, %p477_p4 }
   0xf   :  { %p480_p7 = pnand %p479_p6, %p473_p3 }
  0x11   :  { %483 = shalt.err (!%p480_p7)
}
  0x12   :  { %s581_s11 = smov 256   ;;  %s582_s12 = smov 16  }
  0x13   :  { %41 = dma.hbm_to_vmem [thread:$0]  %s719_s2, 4096, %s36_s25, [#allocation7], %s581_s11, %s581_s11, %s582_s12  }
  0x14   :  { %s583_s15 = smov [#allocation3]   ;;  %s584_s17 = smov [#allocation8]  }
  0x15   :  { %s26_s16 = sshll.u32 %s583_s15, 4  ;;  %s47_s18 = sshll.u32 %s584_s17, 4  ;;  %s27_s16 = int_to_ptr.vmem [resolvable:$true] %s26_s16  ;;  %s48_s18 = int_to_ptr.vmem [resolvable:$true] %s47_s18 }
  0x16   :  { %s484_s21 = scalar_lea.hbm %s718_s1, 128 }
  0x17   :  { %p485_p8 = scmp.ne.s32.totalorder %s718_s1, %s484_s21  ;;  %p488_p9 = scmp.lt.u32.totalorder %s484_s21, %s718_s1 }
  0x19   :  { %p490_p10 = pnand %p488_p9, %p485_p8 }
  0x1b   :  { %493 = shalt.err (!%p490_p10)
}
  0x1c   :  { %s494_s2 = scalar_lea.vmem %s27_s16, 128  ;;  %p499_p12 = scmp.lt.s32.totalorder %s27_s16, %s27_s16 }
  0x1d   :  { %p495_p11 = scmp.ne.s32.totalorder %s27_s16, %s494_s2  ;;  %p500_p13 = scmp.lt.s32.totalorder %s494_s2, %s494_s2 }
  0x1f   :  { %p501_p0 = por %p500_p13, %p499_p12 }
  0x21   :  { %p502_p1 = pnand %p501_p0, %p495_p11 }
  0x23   :  { %505 = shalt.err (!%p502_p1)
}
  0x24   :  { %29 = dma.hbm_to_vmem [thread:$0]  %s718_s1, 128, %s27_s16, [#allocation4]  }
  0x25   :  { %s506_s30 = scalar_lea.hbm %s720_s3, 2048 }
  0x26   :  { %p507_p2 = scmp.ne.s32.totalorder %s720_s3, %s506_s30  ;;  %p510_p3 = scmp.lt.u32.totalorder %s506_s30, %s720_s3 }
  0x28   :  { %p512_p4 = pnand %p510_p3, %p507_p2 }
  0x2a   :  { %515 = shalt.err (!%p512_p4)
}
  0x2b   :  { %s516_s12 = scalar_lea.vmem %s48_s18, 2048  ;;  %p521_p6 = scmp.lt.s32.totalorder %s48_s18, %s48_s18 }
  0x2c   :  { %p517_p5 = scmp.ne.s32.totalorder %s48_s18, %s516_s12  ;;  %p522_p7 = scmp.lt.s32.totalorder %s516_s12, %s516_s12 }
  0x2e   :  { %p523_p8 = por %p522_p7, %p521_p6 }
  0x30   :  { %p524_p9 = pnand %p523_p8, %p517_p5 }
  0x32   :  { %527 = shalt.err (!%p524_p9)
}
  0x33   :  { %s585_s1 = smov 128   ;;  %s586_s13 = smov 8  }
  0x34   :  { %53 = dma.hbm_to_vmem [thread:$0]  %s720_s3, 2048, %s48_s18, [#allocation7], %s585_s1, %s585_s1, %s586_s13  }
  0x35   :  { %572 = dma.done.wait [#allocation4], 128  }
  0x36   :  { %573 = vsyncadd [#allocation4], 4294967168 }
  0x37   :  { %574 = dma.done.wait [#allocation7], 6144  }
  0x38   :  { %575 = vsyncadd [#allocation7], 4294961152  ;;  %v587_v0 = vmov 0.0   ;;  %v588_v1 = vmov 0.0|0.0   ;;  %v69_v2 = vld [vmem:[#allocation6 + $0x8] sm:$0xff]  ;;  %v71_v3 = vld [vmem:[#allocation6 + $0x18] sm:$0xff] }
  0x39   :  { %194 = vmatprep.mubr.f32.mxu0 %v587_v0  ;;  %416 = vmatprep.subr.bf16.mxu1 %v588_v1  ;;  %v68_v4 = vld [vmem:[#allocation6] sm:$0xff]  ;;  %v384_v5 = vpack.c.bf16 %v71_v3, %v69_v2  ;;  %v70_v6 = vld [vmem:[#allocation6 + $0x10] sm:$0xff]  ;;  %v73_v7 = vld [vmem:[#allocation6 + $0x28] sm:$0xff]  ;;  %vm589_vm0 = vmmov 0   ;;  %s590_s18 = smov [#allocation10]  }
  0x3a   :  { %v75_v8 = vld [vmem:[#allocation6 + $0x38] sm:$0xff]  ;;  %v386_v9 = vpack.c.bf16 %v70_v6, %v68_v4  ;;  %v72_v11 = vld [vmem:[#allocation6 + $0x20] sm:$0xff]  ;;  %v74_v12 = vld [vmem:[#allocation6 + $0x30] sm:$0xff]  ;;  %381 = vmatprep.mubr.msk.f32.mxu1 %vm589_vm0, %v587_v0  ;;  %s315_s19 = sshll.u32 %s590_s18, 4  ;;  %s316_s19 = int_to_ptr.vmem [resolvable:$true] %s315_s19 }
  0x3b   :  { %v388_v10 = vpack.c.bf16 %v75_v8, %v73_v7  ;;  %v77_v13 = vld [vmem:[#allocation6 + $0x48] sm:$0xff]  ;;  %385 = vmatprep.subr.bf16.mxu0 %v384_v5  ;;  %v79_v14 = vld [vmem:[#allocation6 + $0x58] sm:$0xff]  ;;  %v390_v15 = vpack.c.bf16 %v74_v12, %v72_v11  ;;  %v76_v17 = vld [vmem:[#allocation6 + $0x40] sm:$0xff]  ;;  %s528_s22 = scalar_lea.vmem %s316_s19, 128  ;;  %p533_p11 = scmp.lt.s32.totalorder %s316_s19, %s316_s19 }
  0x3c   :  { %387 = vmatpush1.bf16.msra.mxu0 %v386_v9  ;;  %v392_v16 = vpack.c.bf16 %v79_v14, %v77_v13  ;;  %v78_v18 = vld [vmem:[#allocation6 + $0x50] sm:$0xff]  ;;  %v81_v19 = vld [vmem:[#allocation6 + $0x68] sm:$0xff]  ;;  %v83_v20 = vld [vmem:[#allocation6 + $0x78] sm:$0xff]  ;;  %v120_v13 = vlaneseq  ;;  %p529_p10 = scmp.ne.s32.totalorder %s316_s19, %s528_s22  ;;  %p534_p12 = scmp.lt.s32.totalorder %s528_s22, %s528_s22 }
  0x3d   :  { %389 = vmatprep.subr.bf16.mxu0 %v388_v10  ;;  %v394_v21 = vpack.c.bf16 %v78_v18, %v76_v17  ;;  %v396_v22 = vpack.c.bf16 %v83_v20, %v81_v19  ;;  %v80_v23 = vld [vmem:[#allocation6 + $0x60] sm:$0xff]  ;;  %v82_v24 = vld [vmem:[#allocation6 + $0x70] sm:$0xff]  ;;  %v85_v25 = vld [vmem:[#allocation6 + $0x88] sm:$0xff] }
  0x3e   :  { %v87_v26 = vld [vmem:[#allocation6 + $0x98] sm:$0xff]  ;;  %v398_v27 = vpack.c.bf16 %v82_v24, %v80_v23  ;;  %v84_v29 = vld [vmem:[#allocation6 + $0x80] sm:$0xff]  ;;  %v86_v30 = vld [vmem:[#allocation6 + $0x90] sm:$0xff]  ;;  %v121_v14 = vshrl.u32 %v120_v13, 7  ;;  %p535_p13 = por %p534_p12, %p533_p11 }
  0x3f   :  { %v400_v28 = vpack.c.bf16 %v87_v26, %v85_v25  ;;  %v89_v31 = vld [vmem:[#allocation6 + $0xa8] sm:$0xff]  ;;  %v91_v32 = vld [vmem:[#allocation6 + $0xb8] sm:$0xff]  ;;  %v402_v33 = vpack.c.bf16 %v86_v30, %v84_v29  ;;  %v88_v35 = vld [vmem:[#allocation6 + $0xa0] sm:$0xff] }
  0x40   :  { %391 = vmatpush1.bf16.msra.mxu0 %v390_v15  ;;  %v404_v34 = vpack.c.bf16 %v91_v32, %v89_v31  ;;  %v90_v36 = vld [vmem:[#allocation6 + $0xb0] sm:$0xff]  ;;  %v93_v37 = vld [vmem:[#allocation6 + $0xc8] sm:$0xff]  ;;  %v95_v38 = vld [vmem:[#allocation6 + $0xd8] sm:$0xff]  ;;  %v122_v15 = vsub.s32 0, %v121_v14  ;;  %v126_v0 = vsub.s32 1, %v121_v14  ;;  %p536_p0 = pnand %p535_p13, %p529_p10 }
  0x41   :  { %393 = vmatprep.subr.bf16.mxu0 %v392_v16  ;;  %v406_v39 = vpack.c.bf16 %v90_v36, %v88_v35  ;;  %v408_v40 = vpack.c.bf16 %v95_v38, %v93_v37  ;;  %v92_v41 = vld [vmem:[#allocation6 + $0xc0] sm:$0xff]  ;;  %v94_v42 = vld [vmem:[#allocation6 + $0xd0] sm:$0xff]  ;;  %v97_v43 = vld [vmem:[#allocation6 + $0xe8] sm:$0xff]  ;;  %v294_v38 = vstv %s717_s0 }
  0x42   :  { %v99_v44 = vld [vmem:[#allocation6 + $0xf8] sm:$0xff]  ;;  %v410_v45 = vpack.c.bf16 %v94_v42, %v92_v41  ;;  %v96_v47 = vld [vmem:[#allocation6 + $0xe0] sm:$0xff]  ;;  %v98_v48 = vld [vmem:[#allocation6 + $0xf0] sm:$0xff] }
  0x43   :  { %v412_v46 = vpack.c.bf16 %v99_v44, %v97_v43  ;;  %v414_v49 = vpack.c.bf16 %v98_v48, %v96_v47  ;;  %v670_v50 = vld [vmem:[#allocation3] sm:$0xff]  ;;  %v100_v51 = vld [vmem:[#allocation8] sm:$0xff]  ;;  %v101_v52 = vld [vmem:[#allocation8 + $0x8] sm:$0xff] }
  0x44   :  { %395 = vmatpush1.bf16.msra.mxu0 %v394_v21  ;;  %v417_v53 = vpack.c.bf16 %v101_v52, %v100_v51  ;;  %v102_v54 = vld [vmem:[#allocation8 + $0x10] sm:$0xff]  ;;  %v103_v55 = vld [vmem:[#allocation8 + $0x18] sm:$0xff]  ;;  %v104_v57 = vld [vmem:[#allocation8 + $0x20] sm:$0xff] }
  0x45   :  { %397 = vmatprep.subr.bf16.mxu0 %v396_v22  ;;  %v420_v56 = vpack.c.bf16 %v103_v55, %v102_v54  ;;  %v105_v58 = vld [vmem:[#allocation8 + $0x28] sm:$0xff]  ;;  %v106_v60 = vld [vmem:[#allocation8 + $0x30] sm:$0xff]  ;;  %v107_v61 = vld [vmem:[#allocation8 + $0x38] sm:$0xff] }
  0x46   :  { %418 = vmatpush3.bf16.msra.mxu1 %v417_v53  ;;  %v423_v59 = vpack.c.bf16 %v105_v58, %v104_v57  ;;  %v426_v62 = vpack.c.bf16 %v107_v61, %v106_v60  ;;  %v108_v63 = vld [vmem:[#allocation8 + $0x40] sm:$0xff]  ;;  %v109_v2 = vld [vmem:[#allocation8 + $0x48] sm:$0xff]  ;;  %v110_v4 = vld [vmem:[#allocation8 + $0x50] sm:$0xff] }
  0x47   :  { %419 = vmatprep.subr.bf16.mxu1 %v588_v1  ;;  %v429_v3 = vpack.c.bf16 %v109_v2, %v108_v63  ;;  %v111_v5 = vld [vmem:[#allocation8 + $0x58] sm:$0xff]  ;;  %v112_v7 = vld [vmem:[#allocation8 + $0x60] sm:$0xff]  ;;  %v113_v8 = vld [vmem:[#allocation8 + $0x68] sm:$0xff] }
  0x48   :  { %399 = vmatpush1.bf16.msra.mxu0 %v398_v27  ;;  %v432_v6 = vpack.c.bf16 %v111_v5, %v110_v4  ;;  %v435_v9 = vpack.c.bf16 %v113_v8, %v112_v7  ;;  %v114_v10 = vld [vmem:[#allocation8 + $0x70] sm:$0xff]  ;;  %v115_v11 = vld [vmem:[#allocation8 + $0x78] sm:$0xff] }
  0x49   :  { %401 = vmatprep.subr.bf16.mxu0 %v400_v28  ;;  %v438_v12 = vpack.c.bf16 %v115_v11, %v114_v10  ;;  %v116_v16 = vld [vmem:[%s721_s4] sm:$0x3] }
  0x4a   :  { %421 = vmatpush3.bf16.msra.mxu1 %v420_v56  ;;  %v123_v17 = vrot.slane %v116_v16, %v122_v15  ;;  %v127_v25 = vrot.slane %v116_v16, %v126_v0  ;;  %v331_v30 = vld [vmem:[%s722_s5] ss:$0 sm:$0xff] }
  0x4b   :  { %422 = vmatprep.subr.bf16.mxu1 %v588_v1 }
  0x4c   :  { %403 = vmatpush1.bf16.msra.mxu0 %v402_v33 }
  0x4d   :  { %405 = vmatprep.subr.bf16.mxu0 %v404_v34 }
  0x4e   :  { %424 = vmatpush3.bf16.msra.mxu1 %v423_v59 }
  0x4f   :  { %425 = vmatprep.subr.bf16.mxu1 %v588_v1 }
  0x50   :  { %407 = vmatpush1.bf16.msra.mxu0 %v406_v39 }
  0x51   :  { %409 = vmatprep.subr.bf16.mxu0 %v408_v40 }
  0x52   :  { %427 = vmatpush3.bf16.msra.mxu1 %v426_v62 }
  0x53   :  { %428 = vmatprep.subr.bf16.mxu1 %v588_v1 }
  0x54   :  { %411 = vmatpush1.bf16.msra.mxu0 %v410_v45 }
  0x55   :  { %413 = vmatprep.subr.bf16.mxu0 %v412_v46 }
  0x56   :  { %430 = vmatpush3.bf16.msra.mxu1 %v429_v3 }
  0x57   :  { %431 = vmatprep.subr.bf16.mxu1 %v588_v1 }
  0x58   :  { %415 = vmatpush1.bf16.msra.mxu0 %v414_v49 }
  0x5a   :  { %433 = vmatpush3.bf16.msra.mxu1 %v432_v6 }
  0x5b   :  { %195 = vmatmul.mubr.f32.vlgmr.msra.gmra.mrb[0].mxu0 %v670_v50  ;;  %434 = vmatprep.subr.bf16.mxu1 %v588_v1 }
  0x5e   :  { %436 = vmatpush3.bf16.msra.mxu1 %v435_v9 }
  0x5f   :  { %437 = vmatprep.subr.bf16.mxu1 %v588_v1 }
  0x62   :  { %439 = vmatpush3.bf16.msra.mxu1 %v438_v12 }
 0x12e   :  { %v196_v18 = vpop.f32.mrb[0].mxu0 }
 0x12f   :  { %v197_v19 = vadd.f32 %v196_v18, %v123_v17  ;;  %v198_v20 = vpop.f32.mrb[1].mxu0 }
 0x130   :  { %v199_v26 = vadd.f32 %v198_v20, %v127_v25 }
 0x131   :  { %v329_v21 = vmul.f32 -1.442695, %v197_v19 }
 0x132   :  { %v330_v27 = vmul.f32 -1.442695, %v199_v26 }
 0x133   :  { %452 = vpow2.f32 %v329_v21 }
 0x13d   :  { %v453_v1 = vpop.eup %452 }
 0x13e   :  { %v204_v22 = vadd.f32 1.0, %v453_v1 }
 0x140   :  { %454 = vrcp.f32 %v204_v22 }
 0x141   :  { %456 = vpow2.f32 %v330_v27 }
 0x14a   :  { %v455_v23 = vpop.eup %454 }
 0x14b   :  { %v213_v24 = vmul.f32 %v455_v23, %v670_v50  ;;  %v457_v28 = vpop.eup %456 }
 0x14c   :  { %v210_v29 = vadd.f32 1.0, %v457_v28 }
 0x14d   :  { %382 = vmatmul.mubr.f32.vlgmr.msra.gmra.mrb[0].mxu1 %v213_v24 }
 0x14e   :  { %458 = vrcp.f32 %v210_v29 }
 0x158   :  { %v459_v34 = vpop.eup %458 }
 0x159   :  { %v291_v36 = vsub.f32 1.0, %v459_v34 }
 0x220   :  { %v286_v31 = vpop.f32.mrb[0].mxu1 }
 0x221   :  { %v287_v32 = vadd.f32 %v331_v30, %v286_v31  ;;  %v383_v33 = vpop.f32.mrb[1].mxu1 }
 0x223   :  { %460 = vtanh.f32 %v287_v32 }
 0x22d   :  { %v461_v35 = vpop.eup %460 }
 0x22e   :  { %298 = vst [vmem:[#allocation10] sm:$0xff] %v461_v35  ;;  %v292_v37 = vsub.f32 %v461_v35, %v670_v50 }
 0x22f   :  { %539 = shalt.err (!%p536_p0)
}
 0x230   :  { %s540_s24 = scalar_lea.hbm %s724_s7, 128 }
 0x231   :  { %p541_p1 = scmp.ne.s32.totalorder %s724_s7, %s540_s24  ;;  %p544_p2 = scmp.lt.u32.totalorder %s540_s24, %s724_s7 }
 0x233   :  { %p546_p3 = pnand %p544_p2, %p541_p1 }
 0x235   :  { %549 = shalt.err (!%p546_p3)
}
 0x236   :  { %318 = dma.vmem_to_hbm [thread:$0]  %s316_s19, 128, %s724_s7, [#allocation11]   ;;  %v293_v39 = vmul.f32 %v292_v37, %v291_v36 }
 0x237   :  { %s591_s29 = smov [#allocation9]  }
 0x238   :  { %s305_s30 = sshll.u32 %s591_s29, 4  ;;  %v295_v40 = vmul.f32 %v294_v38, %v293_v39  ;;  %s306_s30 = int_to_ptr.vmem [resolvable:$true] %s305_s30 }
 0x239   :  { %s550_s8 = scalar_lea.vmem %s306_s30, 128  ;;  %p555_p5 = scmp.lt.s32.totalorder %s306_s30, %s306_s30 }
 0x23a   :  { %v296_v41 = vadd.f32 %v295_v40, %v670_v50  ;;  %p551_p4 = scmp.ne.s32.totalorder %s306_s30, %s550_s8  ;;  %p556_p6 = scmp.lt.s32.totalorder %s550_s8, %s550_s8 }
 0x23c   :  { %297 = vst [vmem:[#allocation9] sm:$0xff] %v296_v41  ;;  %p557_p7 = por %p556_p6, %p555_p5 }
 0x23e   :  { %p558_p8 = pnand %p557_p7, %p551_p4 }
 0x240   :  { %561 = shalt.err (!%p558_p8)
}
 0x241   :  { %s562_s11 = scalar_lea.hbm %s723_s6, 128 }
 0x242   :  { %p563_p9 = scmp.ne.s32.totalorder %s723_s6, %s562_s11  ;;  %p566_p10 = scmp.lt.u32.totalorder %s562_s11, %s723_s6 }
 0x244   :  { %p568_p11 = pnand %p566_p10, %p563_p9 }
 0x246   :  { %571 = shalt.err (!%p568_p11)
}
 0x247   :  { %308 = dma.vmem_to_hbm [thread:$0]  %s306_s30, 128, %s723_s6, [#allocation5]  }
 0x248   :  { %576 = dma.done.wait [#allocation5], 128  }
 0x249   :  { %577 = vsyncadd [#allocation5], 4294967168 }
 0x24a   :  { %578 = dma.done.wait [#allocation11], 128  }
 0x24b   :  { %579 = vsyncadd [#allocation11], 4294967168 }
 0x24c   :  { %325 = vsyncpa [#allocation4], 1 }
 0x24d   :  { %326 = vsyncpa [#allocation7], 1 }
 0x24e   :  { %327 = vsyncpa [#allocation5], 1 }
 0x24f   :  { %328 = vsyncpa [#allocation11], 1 }

</bundles_post_ra>
